<compile_context>
chip_gen: v7x
topology: tpu7x:2x2x1
jax: 0.10.0
libtpu: 0.0.40
codegen_flags: <defaults>
</compile_context>

<pallas_src>
import functools

import jax
import jax.numpy as jnp
from jax import lax
from jax.experimental import pallas as pl
from jax.experimental.pallas import tpu as pltpu

LN_EPS = 1e-5


def _round_up(x, m):
    return (x + m - 1) // m * m


def _vmem_capacity_bytes():
    # Per-TensorCore VMEM; conservative fallback (v7x = 64 MiB/TC) when the
    # query is unavailable.
    try:
        cap = getattr(pltpu.get_tpu_info(), "vmem_capacity_bytes", None)
        if cap:
            return int(cap)
    except Exception:
        pass
    return 64 * 1024 * 1024


def _prenorm_kernel(x_ref, gamma_ref, beta_ref, w_ref, b_ref, o_ref, xn_ref, *, true_d):
    # Grid is (row_tiles, h_tiles). LayerNorm runs once per row tile (j == 0)
    # and its bf16 result is cached in xn_ref for every H tile of that row tile.
    #
    # x_ref:     (TR, Dp)  tile of rows (lanes beyond true_d zero-padded)
    # gamma_ref: (1, Dp)   LayerNorm weight (zero-padded), f32
    # beta_ref:  (1, Dp)   LayerNorm bias   (zero-padded), f32
    # w_ref:     (Dp, TN)  fn (Linear) weight, pre-transposed, bf16, zero-padded
    # b_ref:     (1, TN)   fn (Linear) bias  (zero-padded), f32
    # o_ref:     (TR, TN)
    # xn_ref:    (TR, Dp)  bf16 scratch holding the normalized activations
    @pl.when(pl.program_id(1) == 0)
    def _():
        x = x_ref[...].astype(jnp.float32)
        inv_d = 1.0 / float(true_d)
        mean = jnp.sum(x, axis=-1, keepdims=True) * inv_d
        centered = x - mean
        if true_d != x.shape[-1]:
            # Zero the padded lanes so the two-pass variance uses the true D only.
            lane = lax.broadcasted_iota(jnp.int32, x.shape, 1)
            centered = jnp.where(lane < true_d, centered, 0.0)
        var = jnp.sum(centered * centered, axis=-1, keepdims=True) * inv_d
        inv_std = lax.rsqrt(var + LN_EPS)
        xn = centered * inv_std * gamma_ref[...] + beta_ref[...]
        xn_ref[...] = xn.astype(xn_ref.dtype)

    # fn: Linear projection on the MXU (bf16 operands, f32 accumulate).
    y = jnp.dot(xn_ref[...], w_ref[...], preferred_element_type=jnp.float32)
    o_ref[...] = (y + b_ref[...]).astype(o_ref.dtype)


def prepare_prenorm_params(gamma, beta, w, b):
    """One-time parameter prep (hoisted out of the per-forward path).

    gamma, beta: (D,)   LayerNorm affine params
    w:           (H, D) fn (Linear) weight in PyTorch layout
    b:           (H,)   fn (Linear) bias
    Returns lane-padded (gamma_p, beta_p, wT, b_p) ready for prenorm_forward.
    """
    D = gamma.shape[0]
    H, Dw = w.shape
    assert Dw == D, "w must be (hidden, dim)"
    Dp = _round_up(D, 128)
    Hp = _round_up(H, 128)
    gamma_p = jnp.pad(gamma.astype(jnp.float32), (0, Dp - D)).reshape(1, Dp)
    beta_p = jnp.pad(beta.astype(jnp.float32), (0, Dp - D)).reshape(1, Dp)
    wT = jnp.pad(w.T.astype(jnp.bfloat16), ((0, Dp - D), (0, Hp - H)))  # (Dp, Hp)
    b_p = jnp.pad(b.astype(jnp.float32), (0, Hp - H)).reshape(1, Hp)
    return gamma_p, beta_p, wT, b_p


def _spec(shape, index_map, single_buffer):
    if single_buffer:
        return pl.BlockSpec(shape, index_map, pipeline_mode=pl.Buffered(1))
    return pl.BlockSpec(shape, index_map)


@functools.partial(jax.jit, static_argnames=("true_h", "tile_rows", "force_tn"))
def prenorm_forward(x, gamma_p, beta_p, wT, b_p, *, true_h, tile_rows=None, force_tn=None):
    """PreNorm forward: Linear(LayerNorm(x)).

    x:                  (B, N, D)
    gamma_p/beta_p/wT/b_p: outputs of prepare_prenorm_params
    true_h:             unpadded hidden size H (static)
    returns             (B, N, H) in x.dtype
    """
    B, N, D = x.shape
    Dp, Hp = wT.shape
    H = true_h
    rows = B * N
    x_itemsize = jnp.dtype(x.dtype).itemsize
    out_dtype = x.dtype
    out_itemsize = jnp.dtype(out_dtype).itemsize

    x2 = x.reshape(rows, D)
    if D != Dp:  # lane-pad only when needed (no-op HBM-wise when D % 128 == 0)
        x2 = jnp.pad(x2, ((0, 0), (0, Dp - D)))

    # --- per-TensorCore VMEM budget -----------------------------------------
    usable = (_vmem_capacity_bytes() * 3) // 4

    # H (output-column) tiling: keep the resident W^T bounded (mainly a v7x
    # 64 MiB/TC concern); single row grid + resident weight otherwise.
    weight_budget = min(24 * 1024 * 1024, usable // 3)
    if force_tn is not None:
        if Hp % force_tn != 0:
            raise ValueError("force_tn must divide the padded hidden dim")
        TN = force_tn
    elif Dp * Hp * 2 <= weight_budget:
        TN = Hp
    else:
        TN = 128
        for cand in (1024, 512, 256):
            if Hp % cand == 0 and 2 * Dp * cand * 2 <= weight_budget:
                TN = cand
                break
    h_tiles = Hp // TN
    w_resident = h_tiles == 1  # grid-invariant weight -> single-buffered

    # Row tile: as large as the budget allows (multiple of 256 for the MXU),
    # capped at 1024 rows and at the (8-rounded) row count.
    if tile_rows is None:
        per_row = (2 * (Dp * x_itemsize + TN * out_itemsize)  # dbl-buffered x/out
                   + (Dp + TN) * 8                            # f32 intermediates
                   + Dp * 2)                                  # xn scratch
        tr = max(256, min(1024, (usable // 3) // max(per_row, 1)))
        tile_rows = max(256, (tr // 256) * 256)
    tile_rows = min(tile_rows, _round_up(rows, 8))
    if tile_rows % 8 != 0:
        raise ValueError("tile_rows must be a multiple of 8")

    row_tiles = pl.cdiv(rows, tile_rows)  # tail rows handled by Pallas masking
    grid = (row_tiles, h_tiles)

    # --- exact VMEM accounting ------------------------------------------------
    w_bufs = 1 if w_resident else 2
    vmem_est = (2 * tile_rows * Dp * x_itemsize        # x tiles (double-buffered)
                + 2 * tile_rows * TN * out_itemsize    # out tiles (double-buffered)
                + w_bufs * Dp * TN * 2                 # W^T tile(s), bf16
                + 2 * Dp * 4 + w_bufs * TN * 4         # gamma/beta + bias
                + tile_rows * Dp * 2                   # xn scratch (bf16)
                + 2 * tile_rows * (Dp + TN) * 4)       # f32 temporaries headroom
    vmem_limit = int(min(usable, max(vmem_est * 5 // 4 + (1 << 20), 8 * 1024 * 1024)))

    cost = pl.CostEstimate(
        flops=2 * rows * Dp * Hp,
        transcendentals=rows,  # one rsqrt per row
        bytes_accessed=(rows * Dp * x_itemsize + rows * Hp * out_itemsize
                        + Dp * Hp * 2 * (1 if w_resident else row_tiles)
                        + 2 * Dp * 4 + Hp * 4),
    )

    kernel = functools.partial(_prenorm_kernel, true_d=D)

    out = pl.pallas_call(
        kernel,
        out_shape=jax.ShapeDtypeStruct((rows, Hp), out_dtype),
        grid_spec=pltpu.PrefetchScalarGridSpec(
            num_scalar_prefetch=0,
            grid=grid,
            in_specs=[
                pl.BlockSpec((tile_rows, Dp), lambda i, j: (i, 0)),  # x rows
                _spec((1, Dp), lambda i, j: (0, 0), True),           # gamma (single-buf)
                _spec((1, Dp), lambda i, j: (0, 0), True),           # beta  (single-buf)
                _spec((Dp, TN), lambda i, j: (0, j), w_resident),    # W^T
                _spec((1, TN), lambda i, j: (0, j), w_resident),     # bias
            ],
            out_specs=pl.BlockSpec((tile_rows, TN), lambda i, j: (i, j)),
            scratch_shapes=[pltpu.VMEM((tile_rows, Dp), jnp.bfloat16)],  # cached xn
        ),
        compiler_params=pltpu.CompilerParams(
            dimension_semantics=("parallel", "arbitrary"),
            vmem_limit_bytes=vmem_limit,
        ),
        cost_estimate=cost,
    )(x2, gamma_p, beta_p, wT, b_p)

    if Hp != H:
        out = out[:, :H]
    return out.reshape(B, N, H)


def _reference(x, gamma, beta, w, b):
    # Pure-f32 reference matching PyTorch LayerNorm + Linear semantics.
    xf = x.astype(jnp.float32)
    mean = jnp.mean(xf, axis=-1, keepdims=True)
    var = jnp.mean((xf - mean) ** 2, axis=-1, keepdims=True)
    xn = (xf - mean) * lax.rsqrt(var + LN_EPS)
    xn = xn * gamma + beta
    return (xn @ w.T + b).astype(x.dtype)


if __name__ == "__main__":
    # Small shapes consistent with the module: batch=2, seq=8, dim=32, hidden=32.
    B, N, D, H = 2, 8, 32, 32

    key = jax.random.PRNGKey(0)
    kx, kg, kb, kw, kbl = jax.random.split(key, 5)

    x = jax.random.normal(kx, (B, N, D), dtype=jnp.float32)
    gamma = jnp.ones((D,), jnp.float32) + 0.1 * jax.random.normal(kg, (D,), jnp.float32)
    beta = 0.1 * jax.random.normal(kb, (D,), jnp.float32)
    w = jax.random.normal(kw, (H, D), jnp.float32) * (1.0 / jnp.sqrt(D))
    b = 0.1 * jax.random.normal(kbl, (H,), jnp.float32)

    params = prepare_prenorm_params(gamma, beta, w, b)   # one-time weight prep
    ref = _reference(x, gamma, beta, w, b)

    # Default tiling (single tile at these tiny shapes) + explicit tile_rows=8
    # to exercise the multi-step, double-buffered row grid.
    out_default = jax.block_until_ready(prenorm_forward(x, *params, true_h=H))
    out_tiled = jax.block_until_ready(prenorm_forward(x, *params, true_h=H, tile_rows=8))

    # Exercise the 2-D (row, H-tile) grid path with the cached-xn scratch and
    # double-buffered weight tiles (still small shapes: hidden=256 -> 2 H tiles).
    D2, H2 = 64, 256
    kx2, kg2, kb2, kw2, kbl2 = jax.random.split(jax.random.PRNGKey(1), 5)
    x2 = jax.random.normal(kx2, (B, N, D2), jnp.float32)
    gamma2 = jnp.ones((D2,), jnp.float32) + 0.1 * jax.random.normal(kg2, (D2,), jnp.float32)
    beta2 = 0.1 * jax.random.normal(kb2, (D2,), jnp.float32)
    w2 = jax.random.normal(kw2, (H2, D2), jnp.float32) * (1.0 / jnp.sqrt(D2))
    b2 = 0.1 * jax.random.normal(kbl2, (H2,), jnp.float32)
    params2 = prepare_prenorm_params(gamma2, beta2, w2, b2)
    ref2 = _reference(x2, gamma2, beta2, w2, b2)
    out_htiled = jax.block_until_ready(
        prenorm_forward(x2, *params2, true_h=H2, tile_rows=8, force_tn=128))

    # bf16 MXU operands (f32 accumulate) vs. pure-f32 reference.
    for out in (out_default, out_tiled):
        assert out.shape == (B, N, H)
        assert jnp.allclose(out, ref, atol=3e-2, rtol=3e-2), "mismatch vs reference"
    assert out_htiled.shape == (B, N, H2)
    assert jnp.allclose(out_htiled, ref2, atol=3e-2, rtol=3e-2), "mismatch (H-tiled path)"

    print("KERNEL_OK")
</pallas_src>

<mosaic_0001>
module attributes {stable_mosaic.version = 11 : i64} {
  func.func @_prenorm_kernel(%arg0: i32, %arg1: i32, %arg2: memref<16x128xf32, #tpu.memory_space<vmem>>, %arg3: memref<1x128xf32, #tpu.memory_space<vmem>>, %arg4: memref<1x128xf32, #tpu.memory_space<vmem>>, %arg5: memref<128x128xbf16, #tpu.memory_space<vmem>>, %arg6: memref<1x128xf32, #tpu.memory_space<vmem>>, %arg7: memref<16x128xf32, #tpu.memory_space<vmem>>, %arg8: memref<16x128xbf16, #tpu.memory_space<vmem>>) attributes {dimension_semantics = [#tpu.dimension_semantics<parallel>, #tpu.dimension_semantics<arbitrary>], iteration_bounds = array<i64: 1, 1>, scalar_prefetch = 0 : i64, scratch_operands = 1 : i64, tpu.core_type = #tpu.core_type<tc>, window_params = [{transform_indices = @transform_0, window_bounds = array<i64: 16, 128>}, {pipeline_mode = #tpu.pipeline_mode<synchronous>, transform_indices = @transform_1, window_bounds = array<i64: 1, 128>}, {pipeline_mode = #tpu.pipeline_mode<synchronous>, transform_indices = @transform_2, window_bounds = array<i64: 1, 128>}, {pipeline_mode = #tpu.pipeline_mode<synchronous>, transform_indices = @transform_3, window_bounds = array<i64: 128, 128>}, {pipeline_mode = #tpu.pipeline_mode<synchronous>, transform_indices = @transform_4, window_bounds = array<i64: 1, 128>}, {transform_indices = @transform_5, window_bounds = array<i64: 16, 128>}]} {
    %c0_i32 = arith.constant 0 : i32
    %0 = arith.cmpi eq, %arg1, %c0_i32 : i32
    %1 = arith.extui %0 : i1 to i32
    %c0_i32_0 = arith.constant 0 : i32
    %2 = arith.cmpi ne, %1, %c0_i32_0 : i32
    scf.if %2 {
      %c0_8 = arith.constant 0 : index
      %c0_9 = arith.constant 0 : index
      %10 = vector.load %arg2[%c0_8, %c0_9] : memref<16x128xf32, #tpu.memory_space<vmem>>, vector<16x128xf32>
      %cst_10 = arith.constant dense<0.000000e+00> : vector<16xf32>
      %11 = vector.multi_reduction <add>, %10, %cst_10 [1] : vector<16x128xf32> to vector<16xf32>
      %12 = vector.shape_cast %11 : vector<16xf32> to vector<16x1xf32>
      %cst_11 = arith.constant 3.125000e-02 : f32
      %13 = vector.broadcast %cst_11 : f32 to vector<16x1xf32>
      %14 = arith.mulf %12, %13 : vector<16x1xf32>
      %15 = vector.broadcast %14 : vector<16x1xf32> to vector<16x128xf32>
      %16 = arith.subf %10, %15 : vector<16x128xf32>
      %17 = tpu.iota {dimensions = array<i32: 1>} : vector<16x128xi32>
      %c32_i32 = arith.constant 32 : i32
      %18 = vector.broadcast %c32_i32 : i32 to vector<16x128xi32>
      %19 = arith.cmpi slt, %17, %18 : vector<16x128xi32>
      %cst_12 = arith.constant 0.000000e+00 : f32
      %20 = vector.broadcast %cst_12 : f32 to vector<16x128xf32>
      %21 = arith.select %19, %16, %20 : vector<16x128xi1>, vector<16x128xf32>
      %22 = arith.mulf %21, %21 : vector<16x128xf32>
      %cst_13 = arith.constant dense<0.000000e+00> : vector<16xf32>
      %23 = vector.multi_reduction <add>, %22, %cst_13 [1] : vector<16x128xf32> to vector<16xf32>
      %24 = vector.shape_cast %23 : vector<16xf32> to vector<16x1xf32>
      %cst_14 = arith.constant 3.125000e-02 : f32
      %25 = vector.broadcast %cst_14 : f32 to vector<16x1xf32>
      %26 = arith.mulf %24, %25 : vector<16x1xf32>
      %cst_15 = arith.constant 9.99999974E-6 : f32
      %27 = vector.broadcast %cst_15 : f32 to vector<16x1xf32>
      %28 = arith.addf %26, %27 : vector<16x1xf32>
      %29 = math.rsqrt %28 : vector<16x1xf32>
      %30 = vector.broadcast %29 : vector<16x1xf32> to vector<16x128xf32>
      %31 = arith.mulf %21, %30 : vector<16x128xf32>
      %c0_16 = arith.constant 0 : index
      %c0_17 = arith.constant 0 : index
      %32 = vector.load %arg3[%c0_16, %c0_17] : memref<1x128xf32, #tpu.memory_space<vmem>>, vector<1x128xf32>
      %33 = vector.broadcast %32 : vector<1x128xf32> to vector<16x128xf32>
      %34 = arith.mulf %31, %33 : vector<16x128xf32>
      %c0_18 = arith.constant 0 : index
      %c0_19 = arith.constant 0 : index
      %35 = vector.load %arg4[%c0_18, %c0_19] : memref<1x128xf32, #tpu.memory_space<vmem>>, vector<1x128xf32>
      %36 = vector.broadcast %35 : vector<1x128xf32> to vector<16x128xf32>
      %37 = arith.addf %34, %36 : vector<16x128xf32>
      %38 = arith.truncf %37 : vector<16x128xf32> to vector<16x128xbf16>
      %c0_20 = arith.constant 0 : index
      %c0_21 = arith.constant 0 : index
      %39 = vector.load %arg8[%c0_20, %c0_21] : memref<16x128xbf16, #tpu.memory_space<vmem>>, vector<16x128xbf16>
      tpu.vector_store %arg8[%c0_20, %c0_21], %38 {strides = array<i32>} : memref<16x128xbf16, #tpu.memory_space<vmem>>, vector<16x128xbf16>,
    } else {
    }
    %c0 = arith.constant 0 : index
    %c0_1 = arith.constant 0 : index
    %3 = vector.load %arg8[%c0, %c0_1] : memref<16x128xbf16, #tpu.memory_space<vmem>>, vector<16x128xbf16>
    %c0_2 = arith.constant 0 : index
    %c0_3 = arith.constant 0 : index
    %4 = vector.load %arg5[%c0_2, %c0_3] : memref<128x128xbf16, #tpu.memory_space<vmem>>, vector<128x128xbf16>
    %cst = arith.constant dense<0.000000e+00> : vector<16x128xf32>
    %5 = tpu.matmul %3, %4, %cst {dimension_numbers = #tpu.dot_dimension_numbers<[1], [0], [0], [1], [0, 0, 1, 1], [], []>} : vector<16x128xbf16>, vector<128x128xbf16>, vector<16x128xf32> -> vector<16x128xf32>
    %c0_4 = arith.constant 0 : index
    %c0_5 = arith.constant 0 : index
    %6 = vector.load %arg6[%c0_4, %c0_5] : memref<1x128xf32, #tpu.memory_space<vmem>>, vector<1x128xf32>
    %7 = vector.broadcast %6 : vector<1x128xf32> to vector<16x128xf32>
    %8 = arith.addf %5, %7 : vector<16x128xf32>
    %c0_6 = arith.constant 0 : index
    %c0_7 = arith.constant 0 : index
    %9 = vector.load %arg7[%c0_6, %c0_7] : memref<16x128xf32, #tpu.memory_space<vmem>>, vector<16x128xf32>
    tpu.vector_store %arg7[%c0_6, %c0_7], %8 {strides = array<i32>} : memref<16x128xf32, #tpu.memory_space<vmem>>, vector<16x128xf32>,
    return
  }
  func.func @transform_0(%arg0: i32, %arg1: i32) -> (i32, i32) {
    %c0_i32 = arith.constant 0 : i32
    %c0_i32_0 = arith.constant 0 : i32
    return %arg0, %c0_i32 : i32, i32
  }
  func.func @transform_1(%arg0: i32, %arg1: i32) -> (i32, i32) {
    %c0_i32 = arith.constant 0 : i32
    %c0_i32_0 = arith.constant 0 : i32
    %c0_i32_1 = arith.constant 0 : i32
    return %c0_i32, %c0_i32_0 : i32, i32
  }
  func.func @transform_2(%arg0: i32, %arg1: i32) -> (i32, i32) {
    %c0_i32 = arith.constant 0 : i32
    %c0_i32_0 = arith.constant 0 : i32
    %c0_i32_1 = arith.constant 0 : i32
    return %c0_i32, %c0_i32_0 : i32, i32
  }
  func.func @transform_3(%arg0: i32, %arg1: i32) -> (i32, i32) {
    %c0_i32 = arith.constant 0 : i32
    %c0_i32_0 = arith.constant 0 : i32
    return %c0_i32, %arg1 : i32, i32
  }
  func.func @transform_4(%arg0: i32, %arg1: i32) -> (i32, i32) {
    %c0_i32 = arith.constant 0 : i32
    %c0_i32_0 = arith.constant 0 : i32
    return %c0_i32, %arg1 : i32, i32
  }
  func.func @transform_5(%arg0: i32, %arg1: i32) -> (i32, i32) {
    %c0_i32 = arith.constant 0 : i32
    return %arg0, %arg1 : i32, i32
  }
}

</mosaic_0001>

<bundles_post_ra>
// kernel: prenorm_forward.1
= control target key start
LH: loop header
LB: loop body
LE: loop exit
PB: predicated region body
PF: predicated region fallthrough
CT: control target
= control target key end

     0   :  { %10 = vsyncpa [#allocation4], 0  ;;  %s289_s18 = smov [#allocation3]   ;;  %s357_s0 = inlined_call_operand.vmem [shape: f32[16,128], index: 0, kind: input, shape index: {}]   ;;  %s358_s1 = inlined_call_operand.vmem [shape: f32[1,128], index: 1, kind: input, shape index: {}]   ;;  %s359_s2 = inlined_call_operand.vmem [shape: f32[1,128], index: 2, kind: input, shape index: {}]   ;;  %s360_s3 = inlined_call_operand.hbm [shape: bf16[128,128], index: 3, kind: input, shape index: {}]   ;;  %s361_s4 = inlined_call_operand.vmem [shape: f32[1,128], index: 4, kind: input, shape index: {}]   ;;  %s362_s5 = inlined_call_operand.vmem [shape: f32[16,128], index: 5, kind: output, shape index: {}]  }
   0x1   :  { %s22_s19 = sshll.u32 %s289_s18, 4  ;;  %s265_s22 = scalar_lea.hbm %s360_s3, 1024  ;;  %s23_s19 = int_to_ptr.vmem [resolvable:$true] %s22_s19 }
   0x2   :  { %p266_p0 = scmp.ne.s32.totalorder %s360_s3, %s265_s22  ;;  %p269_p1 = scmp.lt.u32.totalorder %s265_s22, %s360_s3 }
   0x4   :  { %p271_p2 = pnand %p269_p1, %p266_p0 }
   0x6   :  { %274 = shalt.err (!%p271_p2)
}
   0x7   :  { %s275_s27 = scalar_lea.vmem %s23_s19, 1024  ;;  %p280_p4 = scmp.lt.s32.totalorder %s23_s19, %s23_s19 }
   0x8   :  { %p276_p3 = scmp.ne.s32.totalorder %s23_s19, %s275_s27  ;;  %p281_p5 = scmp.lt.s32.totalorder %s275_s27, %s275_s27 }
   0xa   :  { %p282_p6 = por %p281_p5, %p280_p4 }
   0xc   :  { %p283_p7 = pnand %p282_p6, %p276_p3 }
   0xe   :  { %286 = shalt.err (!%p283_p7)
}
   0xf   :  { %s290_s28 = smov 64   ;;  %s291_s29 = smov 4  }
  0x10   :  { %28 = dma.hbm_to_vmem [thread:$0]  %s360_s3, 1024, %s23_s19, [#allocation4], %s290_s28, %s290_s28, %s291_s29  }
  0x11   :  { %287 = dma.done.wait [#allocation4], 1024  }
  0x12   :  { %288 = vsyncadd [#allocation4], 4294966272  ;;  %v39_v0 = vld [vmem:[%s357_s0] sm:$0xff]  ;;  %v40_v1 = vld [vmem:[%s357_s0 + $0x8] sm:$0xff]  ;;  %v292_v3 = vmov 0.0   ;;  %v49_v4 = vlaneseq  ;;  %vm293_vm1 = vmmov 0  }
  0x13   :  { %41 = vadd.xlane.f32.xlu0 %v39_v0  ;;  %v253_v2 = vld [vmem:[#allocation3] sm:$0xff]   ;;  %228 = vmatprep.subr.bf16.mxu0 %v292_v3  ;;  %v254_v16 = vld [vmem:[#allocation3 + $0x8] sm:$0xff]   ;;  %v255_v17 = vld [vmem:[#allocation3 + $0x10] sm:$0xff]  }
  0x14   :  { %229 = vmatpush3.bf16.msra.mxu0 %v253_v2  ;;  %v50_v5 = vand.u32 127, %v49_v4  ;;  %v256_v18 = vld [vmem:[#allocation3 + $0x18] sm:$0xff]   ;;  %v257_v19 = vld [vmem:[#allocation3 + $0x20] sm:$0xff]   ;;  %244 = vmatprep.mubr.msk.bf16.mxu0 %vm293_vm1, %v292_v3  ;;  %v258_v20 = vld [vmem:[#allocation3 + $0x28] sm:$0xff]  }
  0x15   :  { %230 = vmatprep.subr.bf16.mxu0 %v292_v3  ;;  %v259_v21 = vld [vmem:[#allocation3 + $0x30] sm:$0xff]   ;;  %v260_v22 = vld [vmem:[#allocation3 + $0x38] sm:$0xff]   ;;  %v208_v31 = vld [vmem:[%s358_s1] ss:$0 sm:$0xff] }
  0x16   :  { %vm51_vm0 = vcmp.lt.s32.totalorder %v50_v5, 32  ;;  %v209_v35 = vld [vmem:[%s359_s2] ss:$0 sm:$0xff] }
  0x17   :  { %43 = vadd.xlane.f32.xlu0 %v40_v1  ;;  %v210_v40 = vld [vmem:[%s361_s4] ss:$0 sm:$0xff] }
  0x18   :  { %231 = vmatpush3.bf16.msra.mxu0 %v254_v16 }
  0x19   :  { %232 = vmatprep.subr.bf16.mxu0 %v292_v3 }
  0x1c   :  { %233 = vmatpush3.bf16.msra.mxu0 %v255_v17 }
  0x1d   :  { %234 = vmatprep.subr.bf16.mxu0 %v292_v3 }
  0x20   :  { %235 = vmatpush3.bf16.msra.mxu0 %v256_v18 }
  0x21   :  { %236 = vmatprep.subr.bf16.mxu0 %v292_v3 }
  0x24   :  { %237 = vmatpush3.bf16.msra.mxu0 %v257_v19 }
  0x25   :  { %238 = vmatprep.subr.bf16.mxu0 %v292_v3 }
  0x28   :  { %239 = vmatpush3.bf16.msra.mxu0 %v258_v20 }
  0x29   :  { %240 = vmatprep.subr.bf16.mxu0 %v292_v3 }
  0x2c   :  { %241 = vmatpush3.bf16.msra.mxu0 %v259_v21 }
  0x2d   :  { %242 = vmatprep.subr.bf16.mxu0 %v292_v3 }
  0x30   :  { %243 = vmatpush3.bf16.msra.mxu0 %v260_v22 }
  0xa0   :  { %v42_v6 = vpop.xlane.xlu0 %41 }
  0xa1   :  { %v45_v7 = vmul.f32 0.03125, %v42_v6 }
  0xa3   :  { %v47_v8 = vsub.f32 %v39_v0, %v45_v7 }
  0xa4   :  { %v44_v9 = vpop.xlane.xlu0 %43 }
  0xa5   :  { %v46_v10 = vmul.f32 0.03125, %v44_v9  ;;  %v52_v11 = vsel %vm51_vm0, %v47_v8, 0.0 }
  0xa6   :  { %v54_v12 = vmul.f32 %v52_v11, %v52_v11 }
  0xa7   :  { %v48_v13 = vsub.f32 %v40_v1, %v46_v10 }
  0xa8   :  { %56 = vadd.xlane.f32.xlu1 %v54_v12 }
  0xa9   :  { %v53_v14 = vsel %vm51_vm0, %v48_v13, 0.0 }
  0xaa   :  { %v55_v15 = vmul.f32 %v53_v14, %v53_v14 }
  0xac   :  { %58 = vadd.xlane.f32.xlu1 %v55_v15 }
 0x135   :  { %v57_v23 = vpop.xlane.xlu1 %56 }
 0x136   :  { %v60_v24 = vmul.f32 0.03125, %v57_v23 }
 0x138   :  { %v62_v25 = vadd.f32 1e-05, %v60_v24 }
 0x139   :  { %v59_v26 = vpop.xlane.xlu1 %58 }
 0x13a   :  { %261 = vrsqrt.f32 %v62_v25  ;;  %v61_v27 = vmul.f32 0.03125, %v59_v26 }
 0x13c   :  { %v63_v28 = vadd.f32 1e-05, %v61_v27 }
 0x13e   :  { %263 = vrsqrt.f32 %v63_v28 }
 0x144   :  { %v262_v29 = vpop.eup %261 }
 0x145   :  { %v66_v30 = vmul.f32 %v262_v29, %v52_v11 }
 0x147   :  { %v75_v34 = vmul.f32 %v208_v31, %v66_v30 }
 0x148   :  { %v264_v32 = vpop.eup %263 }
 0x149   :  { %v67_v33 = vmul.f32 %v264_v32, %v53_v14  ;;  %v84_v37 = vadd.f32 %v209_v35, %v75_v34 }
 0x14b   :  { %v76_v36 = vmul.f32 %v208_v31, %v67_v33 }
 0x14d   :  { %v85_v38 = vadd.f32 %v209_v35, %v76_v36 }
 0x14f   :  { %v86_v39 = vpack.c.bf16 %v85_v38, %v84_v37 }
 0x151   :  { %245 = vmatmul.mubr.bf16.vlgmr.msra.gmra.mrb[0].mxu0 %v86_v39 }
 0x224   :  { %v194_v41 = vpop.f32.mrb[0].mxu0 }
 0x225   :  { %v195_v42 = vadd.f32 %v210_v40, %v194_v41  ;;  %v246_v43 = vpop.f32.mrb[1].mxu0 }
 0x226   :  { %v197_v44 = vpop.f32.mrb[2].mxu0 }
 0x227   :  { %201 = vst [vmem:[%s362_s5] sm:$0xff] %v195_v42  ;;  %v198_v45 = vadd.f32 %v210_v40, %v197_v44  ;;  %v247_v46 = vpop.f32.mrb[3].mxu0 }
 0x229   :  { %202 = vst [vmem:[%s362_s5 + $0x8] sm:$0xff] %v198_v45 }
 0x22a   :  { %207 = vsyncpa [#allocation4], 1 }

</bundles_post_ra>
